<compile_context>
chip_gen: v7x
topology: tpu7x:2x2x1
jax: 0.10.0
libtpu: 0.0.40
codegen_flags: <defaults>
</compile_context>

<pallas_src>
import math
import functools

import jax
import jax.numpy as jnp
from jax.experimental import pallas as pl
from jax.experimental.pallas import tpu as pltpu


def _gather_kernel(ids_ref, w_hbm, out_ref, buf, sem, *, tile, nsem, scale):
    """Gather `tile` embedding rows from HBM with up to `nsem` DMAs in flight.

    ids_ref : SMEM int32[(n_pad,)]         -- scalar-prefetched token ids
    w_hbm   : HBM  f32[(num_token, d_model)] -- full table, never copied whole
    out_ref : VMEM f32[(tile, d_model)]      -- this step's output block
    buf     : VMEM f32[(tile, d_model)]      -- DMA landing buffer
    sem     : DMA semaphores [(nsem,)]
    """
    base = pl.program_id(0) * tile

    def issue(r):
        tid = ids_ref[base + r]                        # scalar read from SMEM
        pltpu.make_async_copy(w_hbm.at[tid], buf.at[r], sem.at[r % nsem]).start()

    def drain(r):
        # Wait for the copy that targeted buf row r (same-shape descriptor;
        # only shape + semaphore matter for .wait()).
        pltpu.make_async_copy(w_hbm.at[0], buf.at[r], sem.at[r % nsem]).wait()

    # Prime: put up to `nsem` row copies in flight (static, unrolled, nsem <= 8).
    for r in range(nsem):
        issue(r)

    # Steady state: retire the oldest outstanding copy, reuse its semaphore slot.
    if tile > nsem:
        @pl.loop(nsem, tile)
        def _steady(r):
            drain(r - nsem)
            issue(r)

    # Drain the tail.
    @pl.loop(tile - nsem, tile)
    def _tail(r):
        drain(r)

    # sqrt(d_model) scale fused into the single writeback pass.
    out_ref[...] = buf[...] * scale


def symbol_encoder(src, weight, *, tile_rows=256, max_inflight=8):
    """src: (B, S) int token ids; weight: (num_token, d_model) f32.

    Returns (B, S, d_model) f32  ==  nn.Embedding(src) * sqrt(d_model).
    (padding_idx only affects gradients in PyTorch; the init overwrites the pad
    row with uniform_, so the forward pass is a plain gather.)
    """
    B, S = src.shape
    num_token, d_model = weight.shape
    scale = math.sqrt(d_model)

    n = B * S
    # Sublane-friendly row tile: multiple of 8, capped at tile_rows.
    tile = min(tile_rows, ((n + 7) // 8) * 8)
    n_pad = pl.cdiv(n, tile) * tile
    nsem = min(max_inflight, tile)

    ids = src.reshape(-1).astype(jnp.int32)
    # Clamp to valid rows so no DMA can go out of bounds; padded tail rows
    # gather row 0 and are sliced off below.
    # TODO(synk): PyTorch nn.Embedding raises on out-of-range ids; here they are clamped.
    ids = jnp.clip(ids, 0, num_token - 1)
    ids = jnp.pad(ids, (0, n_pad - n))

    out = pl.pallas_call(
        functools.partial(_gather_kernel, tile=tile, nsem=nsem, scale=scale),
        out_shape=jax.ShapeDtypeStruct((n_pad, d_model), weight.dtype),
        grid_spec=pltpu.PrefetchScalarGridSpec(
            num_scalar_prefetch=1,                       # ids -> SMEM (scalar path)
            grid=(n_pad // tile,),
            in_specs=[pl.BlockSpec(memory_space=pl.ANY)],  # table stays in HBM
            out_specs=pl.BlockSpec((tile, d_model), lambda i, ids: (i, 0)),
            scratch_shapes=[
                pltpu.VMEM((tile, d_model), weight.dtype),  # DMA landing buffer
                pltpu.SemaphoreType.DMA((nsem,)),           # in-flight row copies
            ],
        ),
        compiler_params=pltpu.CompilerParams(
            dimension_semantics=("parallel",)),
    )(ids, weight)

    return out[:n].reshape(B, S, d_model)


if __name__ == "__main__":
    # Small, module-consistent shapes.
    B, S = 2, 8
    num_token, d_model = 16, 128
    init_range = 0.1
    PAD_ID = 0  # forward semantics are a plain gather (init overwrites pad row)

    key = jax.random.PRNGKey(0)
    k_w, k_src = jax.random.split(key)

    # Deterministic "uniform_(-InitRange, InitRange)" embedding weights.
    weight = jax.random.uniform(
        k_w, (num_token, d_model), dtype=jnp.float32,
        minval=-init_range, maxval=init_range)

    # Token ids in [0, num_token); include some PAD_ID tokens.
    src = jax.random.randint(k_src, (B, S), 0, num_token, dtype=jnp.int32)
    src = src.at[0, 0].set(PAD_ID)

    out = symbol_encoder(src, weight)
    out = jax.block_until_ready(out)

    # Reference: nn.Embedding(src) * sqrt(d_model)
    ref = weight[src] * math.sqrt(d_model)
    assert out.shape == (B, S, d_model)
    assert jnp.allclose(out, ref, atol=1e-6, rtol=1e-6)

    print("KERNEL_OK")
</pallas_src>

<mosaic_0001>
module attributes {stable_mosaic.version = 11 : i64} {
  func.func @_gather_kernel(%arg0: i32, %arg1: memref<16xi32, #tpu.memory_space<smem>>, %arg2: memref<16x128xf32, #tpu.memory_space<any>>, %arg3: memref<16x128xf32, #tpu.memory_space<vmem>>, %arg4: memref<16x128xf32, #tpu.memory_space<vmem>>, %arg5: memref<8x!tpu.dma_semaphore, #tpu.memory_space<semaphore_mem>>) attributes {dimension_semantics = [#tpu.dimension_semantics<parallel>], iteration_bounds = array<i64: 1>, scalar_prefetch = 1 : i64, scratch_operands = 2 : i64, tpu.core_type = #tpu.core_type<tc>, window_params = [{}, {transform_indices = @transform_1, window_bounds = array<i64: 16, 128>}]} {
    %c16_i32 = arith.constant 16 : i32
    %0 = arith.muli %arg0, %c16_i32 : i32
    %c0_i32 = arith.constant 0 : i32
    %1 = arith.addi %0, %c0_i32 : i32
    %2 = arith.index_cast %1 : i32 to index
    %3 = memref.load %arg1[%2] : memref<16xi32, #tpu.memory_space<smem>>
    %c0_i32_0 = arith.constant 0 : i32
    %c0_i32_1 = arith.constant 0 : i32
    %c0_i32_2 = arith.constant 0 : i32
    %4 = tpu.memref_slice %arg2[%3, %c0_i32_2] : memref<16x128xf32, #tpu.memory_space<any>> -> memref<1x128xf32, #tpu.memory_space<any>>
    %5 = tpu.memref_squeeze %4 : memref<1x128xf32, #tpu.memory_space<any>> -> memref<128xf32, #tpu.memory_space<any>>
    %c0_i32_3 = arith.constant 0 : i32
    %6 = tpu.memref_slice %arg4[%c0_i32_0, %c0_i32_3] : memref<16x128xf32, #tpu.memory_space<vmem>> -> memref<1x128xf32, #tpu.memory_space<vmem>>
    %7 = tpu.memref_squeeze %6 : memref<1x128xf32, #tpu.memory_space<vmem>> -> memref<128xf32, #tpu.memory_space<vmem>>
    %8 = tpu.memref_slice %arg5[%c0_i32_1] : memref<8x!tpu.dma_semaphore, #tpu.memory_space<semaphore_mem>> -> memref<1x!tpu.dma_semaphore, #tpu.memory_space<semaphore_mem>>
    %9 = tpu.memref_squeeze %8 : memref<1x!tpu.dma_semaphore, #tpu.memory_space<semaphore_mem>> -> memref<!tpu.dma_semaphore, #tpu.memory_space<semaphore_mem>>
    tpu.enqueue_dma source(%5 : memref<128xf32, #tpu.memory_space<any>>) target(%7 : memref<128xf32, #tpu.memory_space<vmem>>) target_semaphore(%9 : memref<!tpu.dma_semaphore, #tpu.memory_space<semaphore_mem>>)
    %c1_i32 = arith.constant 1 : i32
    %10 = arith.addi %0, %c1_i32 : i32
    %11 = arith.index_cast %10 : i32 to index
    %12 = memref.load %arg1[%11] : memref<16xi32, #tpu.memory_space<smem>>
    %c1_i32_4 = arith.constant 1 : i32
    %c1_i32_5 = arith.constant 1 : i32
    %c0_i32_6 = arith.constant 0 : i32
    %13 = tpu.memref_slice %arg2[%12, %c0_i32_6] : memref<16x128xf32, #tpu.memory_space<any>> -> memref<1x128xf32, #tpu.memory_space<any>>
    %14 = tpu.memref_squeeze %13 : memref<1x128xf32, #tpu.memory_space<any>> -> memref<128xf32, #tpu.memory_space<any>>
    %c0_i32_7 = arith.constant 0 : i32
    %15 = tpu.memref_slice %arg4[%c1_i32_4, %c0_i32_7] : memref<16x128xf32, #tpu.memory_space<vmem>> -> memref<1x128xf32, #tpu.memory_space<vmem>>
    %16 = tpu.memref_squeeze %15 : memref<1x128xf32, #tpu.memory_space<vmem>> -> memref<128xf32, #tpu.memory_space<vmem>>
    %17 = tpu.memref_slice %arg5[%c1_i32_5] : memref<8x!tpu.dma_semaphore, #tpu.memory_space<semaphore_mem>> -> memref<1x!tpu.dma_semaphore, #tpu.memory_space<semaphore_mem>>
    %18 = tpu.memref_squeeze %17 : memref<1x!tpu.dma_semaphore, #tpu.memory_space<semaphore_mem>> -> memref<!tpu.dma_semaphore, #tpu.memory_space<semaphore_mem>>
    tpu.enqueue_dma source(%14 : memref<128xf32, #tpu.memory_space<any>>) target(%16 : memref<128xf32, #tpu.memory_space<vmem>>) target_semaphore(%18 : memref<!tpu.dma_semaphore, #tpu.memory_space<semaphore_mem>>)
    %c2_i32 = arith.constant 2 : i32
    %19 = arith.addi %0, %c2_i32 : i32
    %20 = arith.index_cast %19 : i32 to index
    %21 = memref.load %arg1[%20] : memref<16xi32, #tpu.memory_space<smem>>
    %c2_i32_8 = arith.constant 2 : i32
    %c2_i32_9 = arith.constant 2 : i32
    %c0_i32_10 = arith.constant 0 : i32
    %22 = tpu.memref_slice %arg2[%21, %c0_i32_10] : memref<16x128xf32, #tpu.memory_space<any>> -> memref<1x128xf32, #tpu.memory_space<any>>
    %23 = tpu.memref_squeeze %22 : memref<1x128xf32, #tpu.memory_space<any>> -> memref<128xf32, #tpu.memory_space<any>>
    %c0_i32_11 = arith.constant 0 : i32
    %24 = tpu.memref_slice %arg4[%c2_i32_8, %c0_i32_11] : memref<16x128xf32, #tpu.memory_space<vmem>> -> memref<1x128xf32, #tpu.memory_space<vmem>>
    %25 = tpu.memref_squeeze %24 : memref<1x128xf32, #tpu.memory_space<vmem>> -> memref<128xf32, #tpu.memory_space<vmem>>
    %26 = tpu.memref_slice %arg5[%c2_i32_9] : memref<8x!tpu.dma_semaphore, #tpu.memory_space<semaphore_mem>> -> memref<1x!tpu.dma_semaphore, #tpu.memory_space<semaphore_mem>>
    %27 = tpu.memref_squeeze %26 : memref<1x!tpu.dma_semaphore, #tpu.memory_space<semaphore_mem>> -> memref<!tpu.dma_semaphore, #tpu.memory_space<semaphore_mem>>
    tpu.enqueue_dma source(%23 : memref<128xf32, #tpu.memory_space<any>>) target(%25 : memref<128xf32, #tpu.memory_space<vmem>>) target_semaphore(%27 : memref<!tpu.dma_semaphore, #tpu.memory_space<semaphore_mem>>)
    %c3_i32 = arith.constant 3 : i32
    %28 = arith.addi %0, %c3_i32 : i32
    %29 = arith.index_cast %28 : i32 to index
    %30 = memref.load %arg1[%29] : memref<16xi32, #tpu.memory_space<smem>>
    %c3_i32_12 = arith.constant 3 : i32
    %c3_i32_13 = arith.constant 3 : i32
    %c0_i32_14 = arith.constant 0 : i32
    %31 = tpu.memref_slice %arg2[%30, %c0_i32_14] : memref<16x128xf32, #tpu.memory_space<any>> -> memref<1x128xf32, #tpu.memory_space<any>>
    %32 = tpu.memref_squeeze %31 : memref<1x128xf32, #tpu.memory_space<any>> -> memref<128xf32, #tpu.memory_space<any>>
    %c0_i32_15 = arith.constant 0 : i32
    %33 = tpu.memref_slice %arg4[%c3_i32_12, %c0_i32_15] : memref<16x128xf32, #tpu.memory_space<vmem>> -> memref<1x128xf32, #tpu.memory_space<vmem>>
    %34 = tpu.memref_squeeze %33 : memref<1x128xf32, #tpu.memory_space<vmem>> -> memref<128xf32, #tpu.memory_space<vmem>>
    %35 = tpu.memref_slice %arg5[%c3_i32_13] : memref<8x!tpu.dma_semaphore, #tpu.memory_space<semaphore_mem>> -> memref<1x!tpu.dma_semaphore, #tpu.memory_space<semaphore_mem>>
    %36 = tpu.memref_squeeze %35 : memref<1x!tpu.dma_semaphore, #tpu.memory_space<semaphore_mem>> -> memref<!tpu.dma_semaphore, #tpu.memory_space<semaphore_mem>>
    tpu.enqueue_dma source(%32 : memref<128xf32, #tpu.memory_space<any>>) target(%34 : memref<128xf32, #tpu.memory_space<vmem>>) target_semaphore(%36 : memref<!tpu.dma_semaphore, #tpu.memory_space<semaphore_mem>>)
    %c4_i32 = arith.constant 4 : i32
    %37 = arith.addi %0, %c4_i32 : i32
    %38 = arith.index_cast %37 : i32 to index
    %39 = memref.load %arg1[%38] : memref<16xi32, #tpu.memory_space<smem>>
    %c4_i32_16 = arith.constant 4 : i32
    %c4_i32_17 = arith.constant 4 : i32
    %c0_i32_18 = arith.constant 0 : i32
    %40 = tpu.memref_slice %arg2[%39, %c0_i32_18] : memref<16x128xf32, #tpu.memory_space<any>> -> memref<1x128xf32, #tpu.memory_space<any>>
    %41 = tpu.memref_squeeze %40 : memref<1x128xf32, #tpu.memory_space<any>> -> memref<128xf32, #tpu.memory_space<any>>
    %c0_i32_19 = arith.constant 0 : i32
    %42 = tpu.memref_slice %arg4[%c4_i32_16, %c0_i32_19] : memref<16x128xf32, #tpu.memory_space<vmem>> -> memref<1x128xf32, #tpu.memory_space<vmem>>
    %43 = tpu.memref_squeeze %42 : memref<1x128xf32, #tpu.memory_space<vmem>> -> memref<128xf32, #tpu.memory_space<vmem>>
    %44 = tpu.memref_slice %arg5[%c4_i32_17] : memref<8x!tpu.dma_semaphore, #tpu.memory_space<semaphore_mem>> -> memref<1x!tpu.dma_semaphore, #tpu.memory_space<semaphore_mem>>
    %45 = tpu.memref_squeeze %44 : memref<1x!tpu.dma_semaphore, #tpu.memory_space<semaphore_mem>> -> memref<!tpu.dma_semaphore, #tpu.memory_space<semaphore_mem>>
    tpu.enqueue_dma source(%41 : memref<128xf32, #tpu.memory_space<any>>) target(%43 : memref<128xf32, #tpu.memory_space<vmem>>) target_semaphore(%45 : memref<!tpu.dma_semaphore, #tpu.memory_space<semaphore_mem>>)
    %c5_i32 = arith.constant 5 : i32
    %46 = arith.addi %0, %c5_i32 : i32
    %47 = arith.index_cast %46 : i32 to index
    %48 = memref.load %arg1[%47] : memref<16xi32, #tpu.memory_space<smem>>
    %c5_i32_20 = arith.constant 5 : i32
    %c5_i32_21 = arith.constant 5 : i32
    %c0_i32_22 = arith.constant 0 : i32
    %49 = tpu.memref_slice %arg2[%48, %c0_i32_22] : memref<16x128xf32, #tpu.memory_space<any>> -> memref<1x128xf32, #tpu.memory_space<any>>
    %50 = tpu.memref_squeeze %49 : memref<1x128xf32, #tpu.memory_space<any>> -> memref<128xf32, #tpu.memory_space<any>>
    %c0_i32_23 = arith.constant 0 : i32
    %51 = tpu.memref_slice %arg4[%c5_i32_20, %c0_i32_23] : memref<16x128xf32, #tpu.memory_space<vmem>> -> memref<1x128xf32, #tpu.memory_space<vmem>>
    %52 = tpu.memref_squeeze %51 : memref<1x128xf32, #tpu.memory_space<vmem>> -> memref<128xf32, #tpu.memory_space<vmem>>
    %53 = tpu.memref_slice %arg5[%c5_i32_21] : memref<8x!tpu.dma_semaphore, #tpu.memory_space<semaphore_mem>> -> memref<1x!tpu.dma_semaphore, #tpu.memory_space<semaphore_mem>>
    %54 = tpu.memref_squeeze %53 : memref<1x!tpu.dma_semaphore, #tpu.memory_space<semaphore_mem>> -> memref<!tpu.dma_semaphore, #tpu.memory_space<semaphore_mem>>
    tpu.enqueue_dma source(%50 : memref<128xf32, #tpu.memory_space<any>>) target(%52 : memref<128xf32, #tpu.memory_space<vmem>>) target_semaphore(%54 : memref<!tpu.dma_semaphore, #tpu.memory_space<semaphore_mem>>)
    %c6_i32 = arith.constant 6 : i32
    %55 = arith.addi %0, %c6_i32 : i32
    %56 = arith.index_cast %55 : i32 to index
    %57 = memref.load %arg1[%56] : memref<16xi32, #tpu.memory_space<smem>>
    %c6_i32_24 = arith.constant 6 : i32
    %c6_i32_25 = arith.constant 6 : i32
    %c0_i32_26 = arith.constant 0 : i32
    %58 = tpu.memref_slice %arg2[%57, %c0_i32_26] : memref<16x128xf32, #tpu.memory_space<any>> -> memref<1x128xf32, #tpu.memory_space<any>>
    %59 = tpu.memref_squeeze %58 : memref<1x128xf32, #tpu.memory_space<any>> -> memref<128xf32, #tpu.memory_space<any>>
    %c0_i32_27 = arith.constant 0 : i32
    %60 = tpu.memref_slice %arg4[%c6_i32_24, %c0_i32_27] : memref<16x128xf32, #tpu.memory_space<vmem>> -> memref<1x128xf32, #tpu.memory_space<vmem>>
    %61 = tpu.memref_squeeze %60 : memref<1x128xf32, #tpu.memory_space<vmem>> -> memref<128xf32, #tpu.memory_space<vmem>>
    %62 = tpu.memref_slice %arg5[%c6_i32_25] : memref<8x!tpu.dma_semaphore, #tpu.memory_space<semaphore_mem>> -> memref<1x!tpu.dma_semaphore, #tpu.memory_space<semaphore_mem>>
    %63 = tpu.memref_squeeze %62 : memref<1x!tpu.dma_semaphore, #tpu.memory_space<semaphore_mem>> -> memref<!tpu.dma_semaphore, #tpu.memory_space<semaphore_mem>>
    tpu.enqueue_dma source(%59 : memref<128xf32, #tpu.memory_space<any>>) target(%61 : memref<128xf32, #tpu.memory_space<vmem>>) target_semaphore(%63 : memref<!tpu.dma_semaphore, #tpu.memory_space<semaphore_mem>>)
    %c7_i32 = arith.constant 7 : i32
    %64 = arith.addi %0, %c7_i32 : i32
    %65 = arith.index_cast %64 : i32 to index
    %66 = memref.load %arg1[%65] : memref<16xi32, #tpu.memory_space<smem>>
    %c7_i32_28 = arith.constant 7 : i32
    %c7_i32_29 = arith.constant 7 : i32
    %c0_i32_30 = arith.constant 0 : i32
    %67 = tpu.memref_slice %arg2[%66, %c0_i32_30] : memref<16x128xf32, #tpu.memory_space<any>> -> memref<1x128xf32, #tpu.memory_space<any>>
    %68 = tpu.memref_squeeze %67 : memref<1x128xf32, #tpu.memory_space<any>> -> memref<128xf32, #tpu.memory_space<any>>
    %c0_i32_31 = arith.constant 0 : i32
    %69 = tpu.memref_slice %arg4[%c7_i32_28, %c0_i32_31] : memref<16x128xf32, #tpu.memory_space<vmem>> -> memref<1x128xf32, #tpu.memory_space<vmem>>
    %70 = tpu.memref_squeeze %69 : memref<1x128xf32, #tpu.memory_space<vmem>> -> memref<128xf32, #tpu.memory_space<vmem>>
    %71 = tpu.memref_slice %arg5[%c7_i32_29] : memref<8x!tpu.dma_semaphore, #tpu.memory_space<semaphore_mem>> -> memref<1x!tpu.dma_semaphore, #tpu.memory_space<semaphore_mem>>
    %72 = tpu.memref_squeeze %71 : memref<1x!tpu.dma_semaphore, #tpu.memory_space<semaphore_mem>> -> memref<!tpu.dma_semaphore, #tpu.memory_space<semaphore_mem>>
    tpu.enqueue_dma source(%68 : memref<128xf32, #tpu.memory_space<any>>) target(%70 : memref<128xf32, #tpu.memory_space<vmem>>) target_semaphore(%72 : memref<!tpu.dma_semaphore, #tpu.memory_space<semaphore_mem>>)
    %c0_i32_32 = arith.constant 0 : i32
    %c8_i32 = arith.constant 8 : i32
    %73 = arith.addi %c0_i32_32, %c8_i32 : i32
    %c1_i32_33 = arith.constant 1 : i32
    scf.for %arg6 = %c0_i32_32 to %73 step %c1_i32_33  : i32 {
      %c1_i32_42 = arith.constant 1 : i32
      %79 = arith.muli %arg6, %c1_i32_42 : i32
      %c8_i32_43 = arith.constant 8 : i32
      %80 = arith.addi %c8_i32_43, %79 : i32
      %c8_i32_44 = arith.constant 8 : i32
      %81 = arith.subi %80, %c8_i32_44 : i32
      %c8_i32_45 = arith.constant 8 : i32
      %c0_i32_46 = arith.constant 0 : i32
      %82 = arith.cmpi eq, %c8_i32_45, %c0_i32_46 : i32
      %c1_i32_47 = arith.constant 1 : i32
      %83 = arith.select %82, %c1_i32_47, %c8_i32_45 : i32
      %84 = arith.remsi %81, %83 : i32
      %c0_i32_48 = arith.constant 0 : i32
      %85 = arith.cmpi ne, %84, %c0_i32_48 : i32
      %c0_i32_49 = arith.constant 0 : i32
      %86 = arith.cmpi slt, %84, %c0_i32_49 : i32
      %c0_i32_50 = arith.constant 0 : i32
      %87 = arith.cmpi slt, %83, %c0_i32_50 : i32
      %88 = arith.xori %86, %87 : i1
      %89 = arith.andi %88, %85 : i1
      %90 = arith.addi %84, %83 : i32
      %91 = arith.select %89, %90, %84 : i32
      %c0_i32_51 = arith.constant 0 : i32
      %c0_i32_52 = arith.constant 0 : i32
      %92 = tpu.memref_slice %arg2[%c0_i32_51, %c0_i32_52] : memref<16x128xf32, #tpu.memory_space<any>> -> memref<1x128xf32, #tpu.memory_space<any>>
      %93 = tpu.memref_squeeze %92 : memref<1x128xf32, #tpu.memory_space<any>> -> memref<128xf32, #tpu.memory_space<any>>
      %c0_i32_53 = arith.constant 0 : i32
      %94 = tpu.memref_slice %arg4[%81, %c0_i32_53] : memref<16x128xf32, #tpu.memory_space<vmem>> -> memref<1x128xf32, #tpu.memory_space<vmem>>
      %95 = tpu.memref_squeeze %94 : memref<1x128xf32, #tpu.memory_space<vmem>> -> memref<128xf32, #tpu.memory_space<vmem>>
      %96 = tpu.memref_slice %arg5[%91] : memref<8x!tpu.dma_semaphore, #tpu.memory_space<semaphore_mem>> -> memref<1x!tpu.dma_semaphore, #tpu.memory_space<semaphore_mem>>
      %97 = tpu.memref_squeeze %96 : memref<1x!tpu.dma_semaphore, #tpu.memory_space<semaphore_mem>> -> memref<!tpu.dma_semaphore, #tpu.memory_space<semaphore_mem>>
      tpu.wait_dma2 semaphore(%97 : memref<!tpu.dma_semaphore, #tpu.memory_space<semaphore_mem>>) src(%93 : memref<128xf32, #tpu.memory_space<any>>) dst(%95 : memref<128xf32, #tpu.memory_space<vmem>>)
      %98 = arith.addi %0, %80 : i32
      %99 = arith.index_cast %98 : i32 to index
      %100 = memref.load %arg1[%99] : memref<16xi32, #tpu.memory_space<smem>>
      %c8_i32_54 = arith.constant 8 : i32
      %c0_i32_55 = arith.constant 0 : i32
      %101 = arith.cmpi eq, %c8_i32_54, %c0_i32_55 : i32
      %c1_i32_56 = arith.constant 1 : i32
      %102 = arith.select %101, %c1_i32_56, %c8_i32_54 : i32
      %103 = arith.remsi %80, %102 : i32
      %c0_i32_57 = arith.constant 0 : i32
      %104 = arith.cmpi ne, %103, %c0_i32_57 : i32
      %c0_i32_58 = arith.constant 0 : i32
      %105 = arith.cmpi slt, %103, %c0_i32_58 : i32
      %c0_i32_59 = arith.constant 0 : i32
      %106 = arith.cmpi slt, %102, %c0_i32_59 : i32
      %107 = arith.xori %105, %106 : i1
      %108 = arith.andi %107, %104 : i1
      %109 = arith.addi %103, %102 : i32
      %110 = arith.select %108, %109, %103 : i32
      %c0_i32_60 = arith.constant 0 : i32
      %111 = tpu.memref_slice %arg2[%100, %c0_i32_60] : memref<16x128xf32, #tpu.memory_space<any>> -> memref<1x128xf32, #tpu.memory_space<any>>
      %112 = tpu.memref_squeeze %111 : memref<1x128xf32, #tpu.memory_space<any>> -> memref<128xf32, #tpu.memory_space<any>>
      %c0_i32_61 = arith.constant 0 : i32
      %113 = tpu.memref_slice %arg4[%80, %c0_i32_61] : memref<16x128xf32, #tpu.memory_space<vmem>> -> memref<1x128xf32, #tpu.memory_space<vmem>>
      %114 = tpu.memref_squeeze %113 : memref<1x128xf32, #tpu.memory_space<vmem>> -> memref<128xf32, #tpu.memory_space<vmem>>
      %115 = tpu.memref_slice %arg5[%110] : memref<8x!tpu.dma_semaphore, #tpu.memory_space<semaphore_mem>> -> memref<1x!tpu.dma_semaphore, #tpu.memory_space<semaphore_mem>>
      %116 = tpu.memref_squeeze %115 : memref<1x!tpu.dma_semaphore, #tpu.memory_space<semaphore_mem>> -> memref<!tpu.dma_semaphore, #tpu.memory_space<semaphore_mem>>
      tpu.enqueue_dma source(%112 : memref<128xf32, #tpu.memory_space<any>>) target(%114 : memref<128xf32, #tpu.memory_space<vmem>>) target_semaphore(%116 : memref<!tpu.dma_semaphore, #tpu.memory_space<semaphore_mem>>)
    }
    %c8_i32_34 = arith.constant 8 : i32
    %c0_i32_35 = arith.constant 0 : i32
    %c8_i32_36 = arith.constant 8 : i32
    %74 = arith.addi %c0_i32_35, %c8_i32_36 : i32
    %c1_i32_37 = arith.constant 1 : i32
    scf.for %arg6 = %c0_i32_35 to %74 step %c1_i32_37  : i32 {
      %c1_i32_42 = arith.constant 1 : i32
      %79 = arith.muli %arg6, %c1_i32_42 : i32
      %c8_i32_43 = arith.constant 8 : i32
      %80 = arith.addi %c8_i32_43, %79 : i32
      %c8_i32_44 = arith.constant 8 : i32
      %c0_i32_45 = arith.constant 0 : i32
      %81 = arith.cmpi eq, %c8_i32_44, %c0_i32_45 : i32
      %c1_i32_46 = arith.constant 1 : i32
      %82 = arith.select %81, %c1_i32_46, %c8_i32_44 : i32
      %83 = arith.remsi %80, %82 : i32
      %c0_i32_47 = arith.constant 0 : i32
      %84 = arith.cmpi ne, %83, %c0_i32_47 : i32
      %c0_i32_48 = arith.constant 0 : i32
      %85 = arith.cmpi slt, %83, %c0_i32_48 : i32
      %c0_i32_49 = arith.constant 0 : i32
      %86 = arith.cmpi slt, %82, %c0_i32_49 : i32
      %87 = arith.xori %85, %86 : i1
      %88 = arith.andi %87, %84 : i1
      %89 = arith.addi %83, %82 : i32
      %90 = arith.select %88, %89, %83 : i32
      %c0_i32_50 = arith.constant 0 : i32
      %c0_i32_51 = arith.constant 0 : i32
      %91 = tpu.memref_slice %arg2[%c0_i32_50, %c0_i32_51] : memref<16x128xf32, #tpu.memory_space<any>> -> memref<1x128xf32, #tpu.memory_space<any>>
      %92 = tpu.memref_squeeze %91 : memref<1x128xf32, #tpu.memory_space<any>> -> memref<128xf32, #tpu.memory_space<any>>
      %c0_i32_52 = arith.constant 0 : i32
      %93 = tpu.memref_slice %arg4[%80, %c0_i32_52] : memref<16x128xf32, #tpu.memory_space<vmem>> -> memref<1x128xf32, #tpu.memory_space<vmem>>
      %94 = tpu.memref_squeeze %93 : memref<1x128xf32, #tpu.memory_space<vmem>> -> memref<128xf32, #tpu.memory_space<vmem>>
      %95 = tpu.memref_slice %arg5[%90] : memref<8x!tpu.dma_semaphore, #tpu.memory_space<semaphore_mem>> -> memref<1x!tpu.dma_semaphore, #tpu.memory_space<semaphore_mem>>
      %96 = tpu.memref_squeeze %95 : memref<1x!tpu.dma_semaphore, #tpu.memory_space<semaphore_mem>> -> memref<!tpu.dma_semaphore, #tpu.memory_space<semaphore_mem>>
      tpu.wait_dma2 semaphore(%96 : memref<!tpu.dma_semaphore, #tpu.memory_space<semaphore_mem>>) src(%92 : memref<128xf32, #tpu.memory_space<any>>) dst(%94 : memref<128xf32, #tpu.memory_space<vmem>>)
    }
    %c8_i32_38 = arith.constant 8 : i32
    %c0 = arith.constant 0 : index
    %c0_39 = arith.constant 0 : index
    %75 = vector.load %arg4[%c0, %c0_39] : memref<16x128xf32, #tpu.memory_space<vmem>>, vector<16x128xf32>
    %cst = arith.constant 11.3137083 : f32
    %76 = vector.broadcast %cst : f32 to vector<16x128xf32>
    %77 = arith.mulf %75, %76 : vector<16x128xf32>
    %c0_40 = arith.constant 0 : index
    %c0_41 = arith.constant 0 : index
    %78 = vector.load %arg3[%c0_40, %c0_41] : memref<16x128xf32, #tpu.memory_space<vmem>>, vector<16x128xf32>
    tpu.vector_store %arg3[%c0_40, %c0_41], %77 {strides = array<i32>} : memref<16x128xf32, #tpu.memory_space<vmem>>, vector<16x128xf32>,
    return
  }
  func.func @transform_1(%arg0: i32, %arg1: memref<16xi32, #tpu.memory_space<smem>>) -> (i32, i32) {
    %c0_i32 = arith.constant 0 : i32
    %c0_i32_0 = arith.constant 0 : i32
    return %arg0, %c0_i32 : i32, i32
  }
}

</mosaic_0001>

<bundles_post_ra>
// kernel: tpu_custom_call.1
= control target key start
LH: loop header
LB: loop body
LE: loop exit
PB: predicated region body
PF: predicated region fallthrough
CT: control target
= control target key end

     0   :  { %s863_s0 = inlined_call_operand.hbm [shape: s32[16], index: 0, kind: input, shape index: {}]   ;;  %s864_s1 = inlined_call_operand.hbm [shape: f32[16,128], index: 1, kind: input, shape index: {}]   ;;  %s865_s2 = inlined_call_operand.hbm [shape: f32[16,128], index: 2, kind: output, shape index: {}]  }
   0x1   :  { %s390_s11 = scalar_lea.hbm %s863_s0, 16 }
   0x2   :  { %p391_p0 = scmp.ne.s32.totalorder %s863_s0, %s390_s11  ;;  %p394_p1 = scmp.lt.u32.totalorder %s390_s11, %s863_s0 }
   0x4   :  { %p396_p2 = pnand %p394_p1, %p391_p0 }
   0x6   :  { %399 = shalt.err (!%p396_p2)  }
   0x7   :  { %s662_s16 = smov [#allocation5]  }
   0x8   :  { %8 = dma.hbm_to_smem %s863_s0, 16, %s662_s16, [#allocation4] }
   0x9   :  { %646 = dma.done.wait [#allocation4], 16 }
   0xa   :  { %647 = vsyncadd [#allocation4], 4294967280 }
   0xb   :  { %10 = sfence }
   0xc   :  { %11 = vsyncpa [#allocation7], 0  ;;  %s13_s19 = sld [smem:[#allocation5]]  ;;  %s663_s20 = smov [#allocation2]  }
   0xd   :  { %s23_s21 = sshll.u32 %s663_s20, 4  ;;  %s701_s22 = sld [smem:[#allocation5 + $0x1]]  ;;  %s703_s21 = int_to_ptr.vmem [resolvable:$true] %s23_s21 }
   0xe   :  { %s664_s23 = smov [#allocation2 + $0x1]   ;;  %s705_s25 = sld [smem:[#allocation5 + $0x2]] }
   0xf   :  { %s40_s24 = sshll.u32 %s664_s23, 4  ;;  %s665_s26 = smov [#allocation2 + $0x2]   ;;  %s707_s24 = int_to_ptr.vmem [resolvable:$true] %s40_s24 }
  0x10   :  { %s57_s0 = sshll.u32 %s665_s26, 4  ;;  %s709_s27 = sld [smem:[#allocation5 + $0x3]]  ;;  %s711_s0 = int_to_ptr.vmem [resolvable:$true] %s57_s0 }
  0x11   :  { %s720_s8 = scalar_lea.hbm %s864_s1, 256 }
  0x12   :  { %s329_s28 = sshll.u32 %s13_s19, 4 }
  0x13   :  { %s15_s3 = scalar_lea.hbm %s864_s1, %s329_s28  ;;  %s331_s4 = sshll.u32 %s701_s22, 4 }
  0x14   :  { %s400_s5 = scalar_lea.hbm %s15_s3, 16  ;;  %p403_p4 = scmp.lt.u32.totalorder %s15_s3, %s864_s1 }
  0x15   :  { %p401_p3 = scmp.ne.s32.totalorder %s15_s3, %s400_s5  ;;  %p404_p5 = scmp.lt.u32.totalorder %s720_s8, %s400_s5 }
  0x16   :  { %p406_p7 = scmp.lt.u32.totalorder %s400_s5, %s15_s3 }
  0x17   :  { %p405_p6 = por %p404_p5, %p403_p4 }
  0x19   :  { %p407_p8 = por %p406_p7, %p405_p6 }
  0x1b   :  { %p408_p9 = pnand %p407_p8, %p401_p3 }
  0x1d   :  { %411 = shalt.err (!%p408_p9)  }
  0x1e   :  { %s412_s11 = scalar_lea.vmem %s703_s21, 16  ;;  %s729_s12 = scalar_lea.vmem %s703_s21, 256 }
  0x1f   :  { %p413_p10 = scmp.ne.s32.totalorder %s703_s21, %s412_s11  ;;  %p417_p11 = scmp.lt.s32.totalorder %s703_s21, %s703_s21 }
  0x20   :  { %p418_p12 = scmp.lt.s32.totalorder %s729_s12, %s412_s11 }
  0x22   :  { %p419_p13 = por %p418_p12, %p417_p11 }
  0x24   :  { %p420_p0 = pnand %p419_p13, %p413_p10 }
  0x26   :  { %423 = shalt.err (!%p420_p0)  }
  0x27   :  { %26 = dma.hbm_to_vmem [thread:$0]  %s15_s3, 16, %s703_s21, [#allocation3] }
  0x28   :  { %s30_s15 = scalar_lea.hbm %s864_s1, %s331_s4  ;;  %s333_s16 = sshll.u32 %s705_s25, 4 }
  0x29   :  { %s424_s17 = scalar_lea.hbm %s30_s15, 16  ;;  %p427_p2 = scmp.lt.u32.totalorder %s30_s15, %s864_s1 }
  0x2a   :  { %p425_p1 = scmp.ne.s32.totalorder %s30_s15, %s424_s17  ;;  %p428_p3 = scmp.lt.u32.totalorder %s720_s8, %s424_s17 }
  0x2b   :  { %p430_p5 = scmp.lt.u32.totalorder %s424_s17, %s30_s15 }
  0x2c   :  { %p429_p4 = por %p428_p3, %p427_p2 }
  0x2e   :  { %p431_p6 = por %p430_p5, %p429_p4 }
  0x30   :  { %p432_p7 = pnand %p431_p6, %p425_p1 }
  0x32   :  { %435 = shalt.err (!%p432_p7)  }
  0x33   :  { %s436_s20 = scalar_lea.vmem %s707_s24, 16  ;;  %p441_p9 = scmp.lt.s32.totalorder %s707_s24, %s703_s21 }
  0x34   :  { %p437_p8 = scmp.ne.s32.totalorder %s707_s24, %s436_s20  ;;  %p442_p10 = scmp.lt.s32.totalorder %s729_s12, %s436_s20 }
  0x36   :  { %p443_p11 = por %p442_p10, %p441_p9 }
  0x38   :  { %p444_p12 = pnand %p443_p11, %p437_p8 }
  0x3a   :  { %447 = shalt.err (!%p444_p12)  }
  0x3b   :  { %43 = dma.hbm_to_vmem [thread:$0]  %s30_s15, 16, %s707_s24, [#allocation3 + $0x1] }
  0x3c   :  { %s47_s25 = scalar_lea.hbm %s864_s1, %s333_s16  ;;  %s335_s26 = sshll.u32 %s709_s27, 4 }
  0x3d   :  { %s448_s28 = scalar_lea.hbm %s47_s25, 16  ;;  %p451_p0 = scmp.lt.u32.totalorder %s47_s25, %s864_s1 }
  0x3e   :  { %p449_p13 = scmp.ne.s32.totalorder %s47_s25, %s448_s28  ;;  %p452_p1 = scmp.lt.u32.totalorder %s720_s8, %s448_s28 }
  0x3f   :  { %p454_p3 = scmp.lt.u32.totalorder %s448_s28, %s47_s25 }
  0x40   :  { %p453_p2 = por %p452_p1, %p451_p0 }
  0x42   :  { %p455_p4 = por %p454_p3, %p453_p2 }
  0x44   :  { %p456_p5 = pnand %p455_p4, %p449_p13 }
  0x46   :  { %459 = shalt.err (!%p456_p5)  }
  0x47   :  { %s460_s24 = scalar_lea.vmem %s711_s0, 16  ;;  %p465_p7 = scmp.lt.s32.totalorder %s711_s0, %s703_s21 }
  0x48   :  { %p461_p6 = scmp.ne.s32.totalorder %s711_s0, %s460_s24  ;;  %p466_p8 = scmp.lt.s32.totalorder %s729_s12, %s460_s24 }
  0x4a   :  { %p467_p9 = por %p466_p8, %p465_p7 }
  0x4c   :  { %p468_p10 = pnand %p467_p9, %p461_p6 }
  0x4e   :  { %471 = shalt.err (!%p468_p10)  }
  0x4f   :  { %60 = dma.hbm_to_vmem [thread:$0]  %s47_s25, 16, %s711_s0, [#allocation3 + $0x2] }
  0x50   :  { %s64_s4 = scalar_lea.hbm %s864_s1, %s335_s26  ;;  %s666_s5 = smov [#allocation2 + $0x3]  }
  0x51   :  { %s74_s6 = sshll.u32 %s666_s5, 4  ;;  %s766_s7 = sld [smem:[#allocation5 + $0x4]]  ;;  %s75_s6 = int_to_ptr.vmem [resolvable:$true] %s74_s6 }
  0x52   :  { %s472_s9 = scalar_lea.hbm %s64_s4, 16  ;;  %p475_p12 = scmp.lt.u32.totalorder %s64_s4, %s864_s1 }
  0x53   :  { %p473_p11 = scmp.ne.s32.totalorder %s64_s4, %s472_s9  ;;  %p476_p13 = scmp.lt.u32.totalorder %s720_s8, %s472_s9 }
  0x54   :  { %p478_p1 = scmp.lt.u32.totalorder %s472_s9, %s64_s4 }
  0x55   :  { %p477_p0 = por %p476_p13, %p475_p12 }
  0x57   :  { %p479_p2 = por %p478_p1, %p477_p0 }
  0x59   :  { %p480_p3 = pnand %p479_p2, %p473_p11 }
  0x5b   :  { %483 = shalt.err (!%p480_p3)  }
  0x5c   :  { %s484_s0 = scalar_lea.vmem %s75_s6, 16  ;;  %p489_p5 = scmp.lt.s32.totalorder %s75_s6, %s703_s21 }
  0x5d   :  { %p485_p4 = scmp.ne.s32.totalorder %s75_s6, %s484_s0  ;;  %p490_p6 = scmp.lt.s32.totalorder %s729_s12, %s484_s0 }
  0x5f   :  { %p491_p7 = por %p490_p6, %p489_p5 }
  0x61   :  { %p492_p8 = pnand %p491_p7, %p485_p4 }
  0x63   :  { %495 = shalt.err (!%p492_p8)  }
  0x64   :  { %77 = dma.hbm_to_vmem [thread:$0]  %s64_s4, 16, %s75_s6, [#allocation3 + $0x3] }
  0x65   :  { %s667_s13 = smov [#allocation2 + $0x4]   ;;  %s774_s15 = sld [smem:[#allocation5 + $0x5]] }
  0x66   :  { %s91_s14 = sshll.u32 %s667_s13, 4  ;;  %s668_s16 = smov [#allocation2 + $0x5]   ;;  %s92_s14 = int_to_ptr.vmem [resolvable:$true] %s91_s14 }
  0x67   :  { %s108_s17 = sshll.u32 %s668_s16, 4  ;;  %s776_s18 = sld [smem:[#allocation5 + $0x6]]  ;;  %s779_s17 = int_to_ptr.vmem [resolvable:$true] %s108_s17 }
  0x68   :  { %s337_s19 = sshll.u32 %s766_s7, 4 }
  0x69   :  { %s81_s23 = scalar_lea.hbm %s864_s1, %s337_s19 }
  0x6a   :  { %s496_s25 = scalar_lea.hbm %s81_s23, 16  ;;  %p499_p10 = scmp.lt.u32.totalorder %s81_s23, %s864_s1 }
  0x6b   :  { %p497_p9 = scmp.ne.s32.totalorder %s81_s23, %s496_s25  ;;  %p500_p11 = scmp.lt.u32.totalorder %s720_s8, %s496_s25 }
  0x6c   :  { %p502_p13 = scmp.lt.u32.totalorder %s496_s25, %s81_s23 }
  0x6d   :  { %p501_p12 = por %p500_p11, %p499_p10 }
  0x6f   :  { %p503_p0 = por %p502_p13, %p501_p12 }
  0x71   :  { %p504_p1 = pnand %p503_p0, %p497_p9 }
  0x73   :  { %507 = shalt.err (!%p504_p1)  }
  0x74   :  { %s508_s29 = scalar_lea.vmem %s92_s14, 16  ;;  %p513_p3 = scmp.lt.s32.totalorder %s92_s14, %s703_s21 }
  0x75   :  { %p509_p2 = scmp.ne.s32.totalorder %s92_s14, %s508_s29  ;;  %p514_p4 = scmp.lt.s32.totalorder %s729_s12, %s508_s29 }
  0x77   :  { %p515_p5 = por %p514_p4, %p513_p3 }
  0x79   :  { %p516_p6 = pnand %p515_p5, %p509_p2 }
  0x7b   :  { %519 = shalt.err (!%p516_p6)  }
  0x7c   :  { %94 = dma.hbm_to_vmem [thread:$0]  %s81_s23, 16, %s92_s14, [#allocation3 + $0x4] }
  0x7d   :  { %s339_s30 = sshll.u32 %s774_s15, 4  ;;  %s669_s24 = smov [#allocation2 + $0x6]  }
  0x7e   :  { %s125_s27 = sshll.u32 %s669_s24, 4  ;;  %s98_s5 = scalar_lea.hbm %s864_s1, %s339_s30  ;;  %s794_s27 = int_to_ptr.vmem [resolvable:$true] %s125_s27 }
  0x7f   :  { %s520_s6 = scalar_lea.hbm %s98_s5, 16  ;;  %p523_p8 = scmp.lt.u32.totalorder %s98_s5, %s864_s1 }
  0x80   :  { %p521_p7 = scmp.ne.s32.totalorder %s98_s5, %s520_s6  ;;  %p524_p9 = scmp.lt.u32.totalorder %s720_s8, %s520_s6 }
  0x81   :  { %p526_p11 = scmp.lt.u32.totalorder %s520_s6, %s98_s5 }
  0x82   :  { %p525_p10 = por %p524_p9, %p523_p8 }
  0x84   :  { %p527_p12 = por %p526_p11, %p525_p10 }
  0x86   :  { %p528_p13 = pnand %p527_p12, %p521_p7 }
  0x88   :  { %531 = shalt.err (!%p528_p13)  }
  0x89   :  { %s532_s10 = scalar_lea.vmem %s779_s17, 16  ;;  %p537_p1 = scmp.lt.s32.totalorder %s779_s17, %s703_s21 }
  0x8a   :  { %p533_p0 = scmp.ne.s32.totalorder %s779_s17, %s532_s10  ;;  %p538_p2 = scmp.lt.s32.totalorder %s729_s12, %s532_s10 }
  0x8c   :  { %p539_p3 = por %p538_p2, %p537_p1 }
  0x8e   :  { %p540_p4 = pnand %p539_p3, %p533_p0 }
  0x90   :  { %543 = shalt.err (!%p540_p4)  }
  0x91   :  { %111 = dma.hbm_to_vmem [thread:$0]  %s98_s5, 16, %s779_s17, [#allocation3 + $0x5] }
  0x92   :  { %s341_s11 = sshll.u32 %s776_s18, 4  ;;  %s342_s0 = sld [smem:[#allocation5 + $0x7]] }
  0x93   :  { %s115_s15 = scalar_lea.hbm %s864_s1, %s341_s11 }
  0x94   :  { %s544_s16 = scalar_lea.hbm %s115_s15, 16  ;;  %p547_p6 = scmp.lt.u32.totalorder %s115_s15, %s864_s1 }
  0x95   :  { %p545_p5 = scmp.ne.s32.totalorder %s115_s15, %s544_s16  ;;  %p548_p7 = scmp.lt.u32.totalorder %s720_s8, %s544_s16 }
  0x96   :  { %p550_p9 = scmp.lt.u32.totalorder %s544_s16, %s115_s15 }
  0x97   :  { %p549_p8 = por %p548_p7, %p547_p6 }
  0x99   :  { %p551_p10 = por %p550_p9, %p549_p8 }
  0x9b   :  { %p552_p11 = pnand %p551_p10, %p545_p5 }
  0x9d   :  { %555 = shalt.err (!%p552_p11)  }
  0x9e   :  { %s556_s17 = scalar_lea.vmem %s794_s27, 16  ;;  %p561_p13 = scmp.lt.s32.totalorder %s794_s27, %s703_s21 }
  0x9f   :  { %p557_p12 = scmp.ne.s32.totalorder %s794_s27, %s556_s17  ;;  %p562_p0 = scmp.lt.s32.totalorder %s729_s12, %s556_s17 }
  0xa1   :  { %p563_p1 = por %p562_p0, %p561_p13 }
  0xa3   :  { %p564_p2 = pnand %p563_p1, %p557_p12 }
  0xa5   :  { %567 = shalt.err (!%p564_p2)  }
  0xa6   :  { %128 = dma.hbm_to_vmem [thread:$0]  %s115_s15, 16, %s794_s27, [#allocation3 + $0x6] }
  0xa7   :  { %s670_s18 = smov [#allocation2 + $0x7]   ;;  %s343_s23 = sshll.u32 %s342_s0, 4 }
  0xa8   :  { %s142_s22 = sshll.u32 %s670_s18, 4  ;;  %s132_s28 = scalar_lea.hbm %s864_s1, %s343_s23  ;;  %s143_s22 = int_to_ptr.vmem [resolvable:$true] %s142_s22 }
  0xa9   :  { %s568_s29 = scalar_lea.hbm %s132_s28, 16  ;;  %p571_p4 = scmp.lt.u32.totalorder %s132_s28, %s864_s1 }
  0xaa   :  { %p569_p3 = scmp.ne.s32.totalorder %s132_s28, %s568_s29  ;;  %p572_p5 = scmp.lt.u32.totalorder %s720_s8, %s568_s29 }
  0xab   :  { %p574_p7 = scmp.lt.u32.totalorder %s568_s29, %s132_s28 }
  0xac   :  { %p573_p6 = por %p572_p5, %p571_p4 }
  0xae   :  { %p575_p8 = por %p574_p7, %p573_p6 }
  0xb0   :  { %p576_p9 = pnand %p575_p8, %p569_p3 }
  0xb2   :  { %579 = shalt.err (!%p576_p9)  }
  0xb3   :  { %s580_s27 = scalar_lea.vmem %s143_s22, 16  ;;  %p585_p11 = scmp.lt.s32.totalorder %s143_s22, %s703_s21 }
  0xb4   :  { %p581_p10 = scmp.ne.s32.totalorder %s143_s22, %s580_s27  ;;  %p586_p12 = scmp.lt.s32.totalorder %s729_s12, %s580_s27 }
  0xb6   :  { %p587_p13 = por %p586_p12, %p585_p11 }
  0xb8   :  { %p588_p0 = pnand %p587_p13, %p581_p10 }
  0xba   :  { %591 = shalt.err (!%p588_p0)  }
  0xbb   :  { %145 = dma.hbm_to_vmem [thread:$0]  %s132_s28, 16, %s143_s22, [#allocation3 + $0x7] }
  0xbc   :  { %s829_s3 = smov 0  }
  0xbd LB: > { %s152_s4 = sadd.s32 8, %s656_s3  ;;  %p153_p1 = scmp.lt.s32.totalorder %s656_s3, 0  ;;  %s656_s3 = sphi %s829_s3, %s151_s3  }
  0xbe   : > { %s154_s5 = ssub.s32 0, %s656_s3 }
  0xbf   : > { %s344_s6 = smin.u32 %s656_s3, %s154_s5 }
  0xc0   : > { %s156_s7 = sand.u32 7, %s344_s6  }
  0xc1   : > { %s157_s9 = ssub.s32 0, %s156_s7 }
  0xc2   : > { %s867_s9 = smov (!%p153_p1, %s157_s9), %s156_s7 }
  0xc3   : > { %p346_p2 = scmp.lt.s32.totalorder %s867_s9, 0  ;;  %s163_s10 = sadd.s32 8, %s867_s9 }
  0xc5   : > { %s869_s10 = smov (!%p346_p2, %s163_s10), %s867_s9 }
  0xc6   : > { %s165_s11 = scalar_lea.sflag [#allocation3], %s869_s10 }
  0xc7   : > { %648 = dma.done.wait %s165_s11, 16 }
  0xc8   : > { %649 = vsyncadd %s165_s11, 4294967280  ;;  %p170_p3 = scmp.lt.s32.totalorder %s152_s4, 0  ;;  %s171_s0 = ssub.s32 0, %s152_s4 }
  0xc9   : > { %s169_s13 = sld [smem:[#allocation5 + %s152_s4]]  ;;  %s347_s14 = smin.u32 %s171_s0, %s152_s4 }
  0xca   : > { %s173_s15 = sand.u32 7, %s347_s14   ;;  %s315_s19 = scalar_lea.vmem [#allocation2], %s656_s3 }
  0xcb   : > { %s174_s16 = ssub.s32 0, %s173_s15  ;;  %s316_s20 = scalar_lea.vmem %s315_s19, 8 [#allocation2] }
  0xcc   : > { %s871_s16 = smov (!%p170_p3, %s174_s16), %s173_s15  ;;  %s193_s17 = sshll.u32 %s316_s20, 4  ;;  %s194_s17 = int_to_ptr.vmem [resolvable:$true] %s193_s17 }
  0xcd   : > { %p349_p4 = scmp.lt.s32.totalorder %s871_s16, 0  ;;  %s180_s18 = sadd.s32 8, %s871_s16 }
  0xcf   : > { %s350_s22 = sshll.u32 %s169_s13, 4  ;;  %s873_s18 = smov (!%p349_p4, %s180_s18), %s871_s16 }
  0xd0   : > { %s183_s26 = scalar_lea.hbm %s864_s1, %s350_s22  ;;  %s185_s28 = scalar_lea.sflag [#allocation3], %s873_s18 }
  0xd1   : > { %s592_s29 = scalar_lea.hbm %s183_s26, 16  ;;  %p595_p6 = scmp.lt.u32.totalorder %s183_s26, %s864_s1 }
  0xd2   : > { %p593_p5 = scmp.ne.s32.totalorder %s183_s26, %s592_s29  ;;  %p596_p7 = scmp.lt.u32.totalorder %s720_s8, %s592_s29 }
  0xd3   : > { %p598_p9 = scmp.lt.u32.totalorder %s592_s29, %s183_s26 }
  0xd4   : > { %p597_p8 = por %p596_p7, %p595_p6 }
  0xd6   : > { %p599_p10 = por %p598_p9, %p597_p8 }
  0xd8   : > { %p600_p11 = pnand %p599_p10, %p593_p5 }
  0xda   : > { %603 = shalt.err (!%p600_p11)  }
  0xdb   : > { %s604_s27 = scalar_lea.vmem %s194_s17, 16  ;;  %p609_p13 = scmp.lt.s32.totalorder %s194_s17, %s703_s21 }
  0xdc   : > { %p605_p12 = scmp.ne.s32.totalorder %s194_s17, %s604_s27  ;;  %p610_p0 = scmp.lt.s32.totalorder %s729_s12, %s604_s27 }
  0xde   : > { %p611_p1 = por %p610_p0, %p609_p13 }
  0xe0   : > { %p612_p2 = pnand %p611_p1, %p605_p12 }
  0xe2   : > { %615 = shalt.err (!%p612_p2)  }
  0xe3   : > { %196 = dma.hbm_to_vmem [thread:$0]  %s183_s26, 16, %s194_s17, %s185_s28 }
  0xe4   : > { %s151_s3 = sadd.s32 1, %s656_s3  }
  0xe5   : > { %p148_p3 = scmp.ge.s32.totalorder %s151_s3, 8  }
  0xe6   :  { %s658_s4 = smov (%p148_p3), 0  }
  0xe7   :  { %150 = sbr.rel (!%p148_p3) target bundleno = 189 (0xbd), region = 104 }
  0xee LB: > { %s203_s5 = sadd.s32 8, %s660_s4  ;;  %s660_s4 = sphi %s658_s4, %s202_s4  }
  0xef   : > { %p204_p4 = scmp.lt.s32.totalorder %s203_s5, 0  ;;  %s205_s6 = ssub.s32 0, %s203_s5 }
  0xf0   : > { %s351_s7 = smin.u32 %s205_s6, %s203_s5 }
  0xf1   : > { %s207_s9 = sand.u32 7, %s351_s7  }
  0xf2   : > { %s208_s10 = ssub.s32 0, %s207_s9 }
  0xf3   : > { %s875_s10 = smov (!%p204_p4, %s208_s10), %s207_s9 }
  0xf4   : > { %p353_p5 = scmp.lt.s32.totalorder %s875_s10, 0  ;;  %s214_s11 = sadd.s32 8, %s875_s10 }
  0xf6   : > { %s877_s11 = smov (!%p353_p5, %s214_s11), %s875_s10 }
  0xf7   : > { %s216_s0 = scalar_lea.sflag [#allocation3], %s877_s11 }
  0xf8   : > { %650 = dma.done.wait %s216_s0, 16 }
  0xf9   : > { %651 = vsyncadd %s216_s0, 4294967280  ;;  %s202_s4 = sadd.s32 1, %s660_s4  }
  0xfa   : > { %p199_p6 = scmp.ge.s32.totalorder %s202_s4, 8  }
  0xfb   :  { %v219_v0 = vld [vmem:[#allocation2] sm:$0xff] (%p199_p6)  ;;  %v220_v1 = vld [vmem:[#allocation2 + $0x8] sm:$0xff] (%p199_p6)  ;;  %s671_s1 = smov (%p199_p6), [#allocation6]  }
  0xfc   :  { %201 = sbr.rel (!%p199_p6) target bundleno = 238 (0xee), region = 115  ;;  %v221_v2 = vmul.f32 (%p199_p6), 11.313708, %v219_v0  ;;  %v222_v3 = vmul.f32 (%p199_p6), 11.313708, %v220_v1  ;;  %s230_s21 = sshll.u32 (%p199_p6), %s671_s1, 4  ;;  %s231_s21 = int_to_ptr.vmem [resolvable:$true] %s230_s21 }
  0xfd   :  { %s616_s8 = scalar_lea.vmem (%p199_p6), %s231_s21, 256  ;;  %p621_p8 = scmp.lt.s32.totalorder (%p199_p6), %s231_s21, %s231_s21 }
  0xfe   :  { %223 = vst [vmem:[#allocation6] sm:$0xff] (%p199_p6), %v221_v2  ;;  %224 = vst [vmem:[#allocation6 + $0x8] sm:$0xff] (%p199_p6), %v222_v3  ;;  %p617_p7 = scmp.ne.s32.totalorder (%p199_p6), %s231_s21, %s616_s8  ;;  %p622_p9 = scmp.lt.s32.totalorder (%p199_p6), %s616_s8, %s616_s8 }
 0x100   :  { %p623_p10 = por (%p199_p6), %p622_p9, %p621_p8 }
 0x102   :  { %p624_p11 = pnand (%p199_p6), %p623_p10, %p617_p7 }
 0x104   :  { %627 = shalt.err (!%p624_p11)
}
 0x105   :  { %s628_s13 = scalar_lea.hbm %s865_s2, 256 }
 0x106   :  { %p629_p12 = scmp.ne.s32.totalorder %s865_s2, %s628_s13  ;;  %p632_p13 = scmp.lt.u32.totalorder %s628_s13, %s865_s2 }
 0x108   :  { %p634_p0 = pnand %p632_p13, %p629_p12 }
 0x10a   :  { %637 = shalt.err (!%p634_p0)
}
 0x10b   :  { %s672_s20 = smov 128   ;;  %s673_s17 = smov 8  }
 0x10c   :  { %236 = dma.vmem_to_hbm [thread:$0]  %s231_s21, 256, %s865_s2, [#allocation7], %s672_s20, %s672_s20, %s673_s17  }
 0x10d   :  { %652 = dma.done.wait [#allocation7], 256  }
 0x10e   :  { %653 = vsyncadd [#allocation7], 4294967040 }
 0x10f   :  { %240 = vsyncpa [#allocation7], 1 }
 0x110   :  { %241 = vsyncmov [#allocation3] }
 0x113   :  { %s242_s23 = vpop.sfrf %241 }
 0x114   :  { %p354_p1 = scmp.ne.s32.totalorder %s242_s23, 0 }
 0x116   :  { %246 = shalt.err (%p354_p1)  }
 0x117   :  { %248 = vsyncmov [#allocation3 + $0x1] }
 0x11a   :  { %s249_s25 = vpop.sfrf %248 }
 0x11b   :  { %p355_p2 = scmp.ne.s32.totalorder %s249_s25, 0 }
 0x11d   :  { %253 = shalt.err (%p355_p2)  }
 0x11e   :  { %255 = vsyncmov [#allocation3 + $0x2] }
 0x121   :  { %s256_s26 = vpop.sfrf %255 }
 0x122   :  { %p356_p3 = scmp.ne.s32.totalorder %s256_s26, 0 }
 0x124   :  { %260 = shalt.err (%p356_p3)  }
 0x125   :  { %262 = vsyncmov [#allocation3 + $0x3] }
 0x128   :  { %s263_s28 = vpop.sfrf %262 }
 0x129   :  { %p357_p4 = scmp.ne.s32.totalorder %s263_s28, 0 }
 0x12b   :  { %267 = shalt.err (%p357_p4)  }
 0x12c   :  { %269 = vsyncmov [#allocation3 + $0x4] }
 0x12f   :  { %s270_s2 = vpop.sfrf %269 }
 0x130   :  { %p358_p5 = scmp.ne.s32.totalorder %s270_s2, 0 }
 0x132   :  { %274 = shalt.err (%p358_p5)  }
 0x133   :  { %276 = vsyncmov [#allocation3 + $0x5] }
 0x136   :  { %s277_s29 = vpop.sfrf %276 }
 0x137   :  { %p359_p6 = scmp.ne.s32.totalorder %s277_s29, 0 }
 0x139   :  { %281 = shalt.err (%p359_p6)  }
 0x13a   :  { %283 = vsyncmov [#allocation3 + $0x6] }
 0x13d   :  { %s284_s30 = vpop.sfrf %283 }
 0x13e   :  { %p360_p7 = scmp.ne.s32.totalorder %s284_s30, 0 }
 0x140   :  { %288 = shalt.err (%p360_p7)  }
 0x141   :  { %290 = vsyncmov [#allocation3 + $0x7] }
 0x144   :  { %s291_s24 = vpop.sfrf %290 }
 0x145   :  { %p361_p8 = scmp.ne.s32.totalorder %s291_s24, 0 }
 0x147   :  { %295 = shalt.err (%p361_p8)  }

</bundles_post_ra>
